<compile_context>
chip_gen: v7x
topology: tpu7x:2x2x1
jax: 0.10.0
libtpu: 0.0.40
codegen_flags: <defaults>
</compile_context>

<pallas_src>
import functools
import math

import jax
import jax.numpy as jnp
from jax import lax
from jax.experimental import pallas as pl
from jax.experimental.pallas import tpu as pltpu


_LANES = 128
_VMEM_LIMIT = 32 * 1024 * 1024        # explicit scoped-VMEM request (safe on v5e/v6e/v7x)
_PIPELINE_BUDGET = 12 * 1024 * 1024   # target bytes for the double-buffered working set
_MAX_BLOCK_N = 2048                   # caps narrow (TN,1) block waste and vreg temporaries


# ----------------------------------------------------------------------------
# Kernel helpers (traced inside the Pallas kernels)
# ----------------------------------------------------------------------------
def _project(x_ref, w_ref, b_ref):
    """to_pred: Linear(D -> 1) on one [TN, D] tile via an MXU dot (f32 accum)."""
    x = x_ref[...]                                         # [TN, D] native dtype
    w = w_ref[...].astype(x.dtype)                         # [D, 1]
    z = jnp.dot(x, w, preferred_element_type=jnp.float32)  # [TN, 1]
    return z + b_ref[...].astype(jnp.float32)              # bias broadcast


def _bce_partials(z, y, step, *, ignore_index, n_tokens, block_n):
    """Masked BCE-with-logits partial sums for one tile.

    The ragged last tile (and any uninitialized VMEM overhang) is masked by
    the global token index, so the wrapper never has to pad the activations.
    """
    yf = y.astype(jnp.float32)                             # [TN, 1]
    row = step * block_n + lax.broadcasted_iota(jnp.int32, z.shape, 0)
    valid = row < n_tokens
    # NOTE: exact float equality against ignore_index (= -1) mirrors torch.
    mask = jnp.logical_and(valid, yf != float(ignore_index))
    # Stable BCE-with-logits: max(z,0) - z*y + log(1 + exp(-|z|))
    bce = jnp.maximum(z, 0.0) - z * yf + jnp.log(1.0 + jnp.exp(-jnp.abs(z)))
    bce = jnp.where(mask, bce, 0.0)        # also kills NaN/inf from overhang garbage
    num = jnp.sum(bce, axis=(0, 1), keepdims=True)                      # [1, 1]
    den = jnp.sum(mask.astype(jnp.float32), axis=(0, 1), keepdims=True)  # [1, 1]
    return num, den


# ----------------------------------------------------------------------------
# Kernels
# ----------------------------------------------------------------------------
def _pred_kernel(x_ref, w_ref, b_ref, logits_ref):
    """labels=None path: projection only (no labels DMA, no BCE/EUP work)."""
    z = _project(x_ref, w_ref, b_ref)
    logits_ref[...] = z.astype(logits_ref.dtype)


def _loss_kernel(x_ref, w_ref, b_ref, y_ref, num_ref, den_ref, *,
                 ignore_index, n_tokens, block_n):
    """return_logits=False path: no logits writeback, only partial num/den."""
    i = pl.program_id(0)
    z = _project(x_ref, w_ref, b_ref)
    num, den = _bce_partials(z, y_ref[...], i, ignore_index=ignore_index,
                             n_tokens=n_tokens, block_n=block_n)
    # Per-block scalar partials broadcast across a lane-dense [1, 128] block;
    # the grid axis stays "parallel" (v7x uses both TensorCores).
    num_ref[...] = jnp.broadcast_to(num, num_ref.shape)
    den_ref[...] = jnp.broadcast_to(den, den_ref.shape)


def _loss_logits_kernel(x_ref, w_ref, b_ref, y_ref, logits_ref, num_ref,
                        den_ref, *, ignore_index, n_tokens, block_n):
    """return_logits=True path: logits writeback + partial num/den."""
    i = pl.program_id(0)
    z = _project(x_ref, w_ref, b_ref)
    logits_ref[...] = z.astype(logits_ref.dtype)
    num, den = _bce_partials(z, y_ref[...], i, ignore_index=ignore_index,
                             n_tokens=n_tokens, block_n=block_n)
    num_ref[...] = jnp.broadcast_to(num, num_ref.shape)
    den_ref[...] = jnp.broadcast_to(den, den_ref.shape)


# ----------------------------------------------------------------------------
# Tile policy + pallas_call wrappers
# ----------------------------------------------------------------------------
def _choose_block_n(n, d, itemsize, *, with_labels, with_logits, cap=None):
    """Largest multiple-of-128 token tile fitting the double-buffered budget.

    Narrow (TN, 1) labels/logits blocks pad to (8, 128) tiles in VMEM, i.e.
    512 B/token each -- accounted for so big-D and small-D cases both fit.
    """
    per_token = d * itemsize
    if with_labels:
        per_token += 512
    if with_logits:
        per_token += 512
    tn = (_PIPELINE_BUDGET // (2 * per_token)) // _LANES * _LANES
    n_up = pl.cdiv(n, _LANES) * _LANES            # never exceed the token count
    tn = max(_LANES, min(tn, _MAX_BLOCK_N, n_up))
    if cap is not None:
        tn = max(_LANES, min(tn, cap))
    return int(tn)


def _run_pred(x2d, w_col, b, *, block_cap=None):
    n, d = x2d.shape
    itemsize = jnp.dtype(x2d.dtype).itemsize
    tn = _choose_block_n(n, d, itemsize, with_labels=False, with_logits=True,
                         cap=block_cap)
    grid = pl.cdiv(n, tn)
    return pl.pallas_call(
        _pred_kernel,
        out_shape=jax.ShapeDtypeStruct((n, 1), x2d.dtype),
        grid=(grid,),
        in_specs=[
            pl.BlockSpec((tn, d), lambda i: (i, 0)),   # x tile (pipelined)
            pl.BlockSpec((d, 1), lambda i: (0, 0)),    # to_pred weight (resident)
            pl.BlockSpec((1, 1), lambda i: (0, 0)),    # to_pred bias
        ],
        out_specs=pl.BlockSpec((tn, 1), lambda i: (i, 0)),
        compiler_params=pltpu.CompilerParams(
            dimension_semantics=("parallel",),
            vmem_limit_bytes=_VMEM_LIMIT),
        cost_estimate=pl.CostEstimate(
            flops=2 * n * d,
            transcendentals=0,
            bytes_accessed=n * d * itemsize + n * itemsize + d * 4),
    )(x2d, w_col, b)


def _run_loss(x2d, w_col, b, labels_col, *, ignore_index, with_logits,
              block_cap=None):
    n, d = x2d.shape
    itemsize = jnp.dtype(x2d.dtype).itemsize
    tn = _choose_block_n(n, d, itemsize, with_labels=True,
                         with_logits=with_logits, cap=block_cap)
    grid = pl.cdiv(n, tn)

    kernel_fn = _loss_logits_kernel if with_logits else _loss_kernel
    kernel = functools.partial(kernel_fn, ignore_index=ignore_index,
                               n_tokens=n, block_n=tn)

    part_shape = jax.ShapeDtypeStruct((1, grid * _LANES), jnp.float32)
    part_spec = pl.BlockSpec((1, _LANES), lambda i: (0, i))

    out_shape, out_specs = [], []
    if with_logits:
        out_shape.append(jax.ShapeDtypeStruct((n, 1), x2d.dtype))
        out_specs.append(pl.BlockSpec((tn, 1), lambda i: (i, 0)))
    out_shape += [part_shape, part_shape]
    out_specs += [part_spec, part_spec]

    outs = pl.pallas_call(
        kernel,
        out_shape=tuple(out_shape),
        grid=(grid,),
        in_specs=[
            pl.BlockSpec((tn, d), lambda i: (i, 0)),   # x tile (pipelined)
            pl.BlockSpec((d, 1), lambda i: (0, 0)),    # to_pred weight (resident)
            pl.BlockSpec((1, 1), lambda i: (0, 0)),    # to_pred bias
            pl.BlockSpec((tn, 1), lambda i: (i, 0)),   # labels tile
        ],
        out_specs=tuple(out_specs),
        compiler_params=pltpu.CompilerParams(
            dimension_semantics=("parallel",),
            vmem_limit_bytes=_VMEM_LIMIT),
        cost_estimate=pl.CostEstimate(
            flops=2 * n * d + 10 * n,
            transcendentals=2 * n,
            bytes_accessed=(n * d * itemsize + n * 4 + grid * _LANES * 8
                            + (n * itemsize if with_logits else 0) + d * 4)),
    )(x2d, w_col, b, labels_col)

    if with_logits:
        logits_col, num_parts, den_parts = outs
    else:
        num_parts, den_parts = outs
        logits_col = None

    # Tiny trailing reduction: each block broadcast its scalar across 128
    # lanes; take lane 0 of each block and sum, then divide once.
    num = num_parts.reshape(grid, _LANES)[:, 0].sum()
    den = den_parts.reshape(grid, _LANES)[:, 0].sum()
    # NOTE: if every label == ignore_index, den == 0 and the loss is NaN,
    # matching the original sum/sum semantics.
    loss = num / den
    return loss, logits_col


# ----------------------------------------------------------------------------
# Module wrapper
# ----------------------------------------------------------------------------
class SelfCriticPallas:
    """JAX/Pallas port of SelfCritic.forward()."""

    def __init__(self, key, dim_in, dim_out, block_cap=None):
        k1, k2, k3, k4 = jax.random.split(key, 4)
        # Stand-in for the wrapped `net` (arbitrary external module): a single
        # linear producing activations of shape [..., dim_out].
        # TODO(synk): the real anyenhance `net` transformer is external to
        # SelfCritic and is not reproduced here.
        self.net_w = (jax.random.normal(k1, (dim_in, dim_out), jnp.float32)
                      / math.sqrt(dim_in))
        self.net_b = jax.random.normal(k2, (dim_out,), jnp.float32) * 0.01
        # to_pred = nn.Linear(dim_out, 1), PyTorch-style uniform init.
        bound = 1.0 / math.sqrt(dim_out)
        self.pred_w = jax.random.uniform(k3, (1, dim_out), jnp.float32,
                                         minval=-bound, maxval=bound)
        self.pred_b = jax.random.uniform(k4, (1, 1), jnp.float32,
                                         minval=-bound, maxval=bound)
        self.dim_out = dim_out
        self._block_cap = block_cap      # test hook to force multi-tile grids

    def net_forward(self, x):
        # plain-JAX glue for the wrapped net: [B, S, dim_in] -> [B, S, dim_out]
        return jnp.einsum("bsd,de->bse", x, self.net_w) + self.net_b

    def __call__(self, x, labels=None, ignore_index=-1, return_logits=False):
        B, S, _ = x.shape
        n = B * S
        # Natural token-major [N, D] layout straight from the net (free
        # reshape): no transposed HBM copy, no f32 up-cast, no activation pad.
        h = self.net_forward(x).reshape(n, self.dim_out)
        w_col = self.pred_w.reshape(self.dim_out, 1)       # tiny (D, 1) view of the weight

        if labels is None:
            logits = _run_pred(h, w_col, self.pred_b, block_cap=self._block_cap)
            return logits.reshape(B, S, 1)                 # == to_pred(net(x))

        labels_col = labels.reshape(n, 1).astype(jnp.float32)
        loss, logits_col = _run_loss(h, w_col, self.pred_b, labels_col,
                                     ignore_index=ignore_index,
                                     with_logits=return_logits,
                                     block_cap=self._block_cap)
        if return_logits:
            return loss, logits_col.reshape(B, S)          # rearrange '... 1 -> ...'
        return loss


# ----------------------------------------------------------------------------
# Reference (plain JAX) and self-test
# ----------------------------------------------------------------------------
def _reference(model, x, labels, ignore_index=-1):
    h = model.net_forward(x)
    z = jnp.einsum("bso,o->bs", h, model.pred_w[0]) + model.pred_b[0, 0]
    y = labels.astype(jnp.float32)
    bce = jnp.maximum(z, 0.0) - z * y + jnp.log1p(jnp.exp(-jnp.abs(z)))
    mask = (y != float(ignore_index)).astype(jnp.float32)
    return jnp.sum(bce * mask) / jnp.sum(mask), z


def _check_case(key, B, S, dim_in, dim_out, block_cap=None):
    k_model, k_x, k_lab, k_ign = jax.random.split(key, 4)
    model = SelfCriticPallas(k_model, dim_in, dim_out, block_cap=block_cap)

    x = jax.random.normal(k_x, (B, S, dim_in), jnp.float32)
    labels = jax.random.bernoulli(k_lab, 0.5, (B, S)).astype(jnp.float32)
    ign = jax.random.bernoulli(k_ign, 0.25, (B, S))
    labels = jnp.where(ign, -1.0, labels)

    ref_loss, ref_logits = _reference(model, x, labels, ignore_index=-1)

    # loss + logits path
    loss, logits = model(x, labels=labels, ignore_index=-1, return_logits=True)
    loss = jax.block_until_ready(loss)
    logits = jax.block_until_ready(logits)
    assert logits.shape == (B, S)
    assert jnp.allclose(logits, ref_logits, atol=1e-4, rtol=1e-4), "logits mismatch"
    assert jnp.allclose(loss, ref_loss, atol=1e-4, rtol=1e-4), "loss mismatch"

    # loss-only path (no logits writeback DMA)
    loss_only = jax.block_until_ready(model(x, labels=labels, ignore_index=-1))
    assert jnp.allclose(loss_only, ref_loss, atol=1e-4, rtol=1e-4), "loss-only mismatch"

    # labels=None path: returns to_pred(net(x)) with trailing singleton dim.
    pred_only = jax.block_until_ready(model(x))
    assert pred_only.shape == (B, S, 1)
    assert jnp.allclose(pred_only[..., 0], ref_logits, atol=1e-4, rtol=1e-4), "pred mismatch"


if __name__ == "__main__":
    key = jax.random.PRNGKey(0)
    k0, k1, k2 = jax.random.split(key, 3)
    # Small shapes consistent with the module: batch=2, seq=8..192, hidden=32.
    _check_case(k0, B=2, S=8, dim_in=16, dim_out=32)                    # single ragged tile (N=16)
    _check_case(k1, B=2, S=192, dim_in=16, dim_out=32, block_cap=128)   # 3 full tiles, parallel partials
    _check_case(k2, B=2, S=100, dim_in=16, dim_out=32, block_cap=128)   # ragged last tile (N=200)
    print("KERNEL_OK")
</pallas_src>

<mosaic_0001>
module attributes {stable_mosaic.version = 11 : i64} {
  func.func @_loss_logits_kernel(%arg0: i32, %arg1: memref<128x32xf32, #tpu.memory_space<vmem>>, %arg2: memref<32x1xf32, #tpu.memory_space<vmem>>, %arg3: memref<1x1xf32, #tpu.memory_space<vmem>>, %arg4: memref<128x1xf32, #tpu.memory_space<vmem>>, %arg5: memref<128x1xf32, #tpu.memory_space<vmem>>, %arg6: memref<1x128xf32, #tpu.memory_space<vmem>>, %arg7: memref<1x128xf32, #tpu.memory_space<vmem>>) attributes {dimension_semantics = [#tpu.dimension_semantics<parallel>], iteration_bounds = array<i64: 1>, scalar_prefetch = 0 : i64, scratch_operands = 0 : i64, tpu.core_type = #tpu.core_type<tc>, window_params = [{transform_indices = @transform_0, window_bounds = array<i64: 128, 32>}, {pipeline_mode = #tpu.pipeline_mode<synchronous>, transform_indices = @transform_1, window_bounds = array<i64: 32, 1>}, {pipeline_mode = #tpu.pipeline_mode<synchronous>, transform_indices = @transform_2, window_bounds = array<i64: 1, 1>}, {transform_indices = @transform_3, window_bounds = array<i64: 128, 1>}, {transform_indices = @transform_4, window_bounds = array<i64: 128, 1>}, {transform_indices = @transform_5, window_bounds = array<i64: 1, 128>}, {transform_indices = @transform_6, window_bounds = array<i64: 1, 128>}]} {
    %c0 = arith.constant 0 : index
    %c0_0 = arith.constant 0 : index
    %0 = vector.load %arg1[%c0, %c0_0] : memref<128x32xf32, #tpu.memory_space<vmem>>, vector<128x32xf32>
    %c0_1 = arith.constant 0 : index
    %c0_2 = arith.constant 0 : index
    %1 = vector.load %arg2[%c0_1, %c0_2] : memref<32x1xf32, #tpu.memory_space<vmem>>, vector<32x1xf32>
    %cst = arith.constant dense<0.000000e+00> : vector<128x1xf32>
    %2 = tpu.matmul %0, %1, %cst {dimension_numbers = #tpu.dot_dimension_numbers<[1], [0], [0], [1], [0, 0, 1, 1], [], []>} : vector<128x32xf32>, vector<32x1xf32>, vector<128x1xf32> -> vector<128x1xf32>
    %c0_3 = arith.constant 0 : index
    %c0_4 = arith.constant 0 : index
    %3 = vector.load %arg3[%c0_3, %c0_4] : memref<1x1xf32, #tpu.memory_space<vmem>>, vector<1x1xf32>
    %4 = vector.broadcast %3 : vector<1x1xf32> to vector<128x1xf32>
    %5 = arith.addf %2, %4 : vector<128x1xf32>
    %c0_5 = arith.constant 0 : index
    %c0_6 = arith.constant 0 : index
    %6 = vector.load %arg5[%c0_5, %c0_6] : memref<128x1xf32, #tpu.memory_space<vmem>>, vector<128x1xf32>
    tpu.vector_store %arg5[%c0_5, %c0_6], %5 {strides = array<i32>} : memref<128x1xf32, #tpu.memory_space<vmem>>, vector<128x1xf32>,
    %c0_7 = arith.constant 0 : index
    %c0_8 = arith.constant 0 : index
    %7 = vector.load %arg4[%c0_7, %c0_8] : memref<128x1xf32, #tpu.memory_space<vmem>>, vector<128x1xf32>
    %c128_i32 = arith.constant 128 : i32
    %8 = arith.muli %arg0, %c128_i32 : i32
    %9 = tpu.iota {dimensions = array<i32: 0>} : vector<128x1xi32>
    %10 = vector.broadcast %8 : i32 to vector<128x1xi32>
    %11 = arith.addi %10, %9 : vector<128x1xi32>
    %c16_i32 = arith.constant 16 : i32
    %12 = vector.broadcast %c16_i32 : i32 to vector<128x1xi32>
    %13 = arith.cmpi slt, %11, %12 : vector<128x1xi32>
    %cst_9 = arith.constant -1.000000e+00 : f32
    %14 = vector.broadcast %cst_9 : f32 to vector<128x1xf32>
    %15 = arith.cmpf one, %7, %14 : vector<128x1xf32>
    %16 = arith.andi %13, %15 : vector<128x1xi1>
    %cst_10 = arith.constant 0.000000e+00 : f32
    %17 = vector.broadcast %cst_10 : f32 to vector<128x1xf32>
    %18 = arith.maximumf %5, %17 : vector<128x1xf32>
    %19 = arith.mulf %5, %7 : vector<128x1xf32>
    %20 = arith.subf %18, %19 : vector<128x1xf32>
    %21 = math.absf %5 : vector<128x1xf32>
    %cst_11 = arith.constant 0.000000e+00 : f32
    %22 = vector.broadcast %cst_11 : f32 to vector<128x1xf32>
    %23 = arith.subf %22, %21 : vector<128x1xf32>
    %24 = math.exp %23 : vector<128x1xf32>
    %cst_12 = arith.constant 1.000000e+00 : f32
    %25 = vector.broadcast %cst_12 : f32 to vector<128x1xf32>
    %26 = arith.addf %25, %24 : vector<128x1xf32>
    %27 = math.log %26 : vector<128x1xf32>
    %28 = arith.addf %20, %27 : vector<128x1xf32>
    %cst_13 = arith.constant 0.000000e+00 : f32
    %29 = vector.broadcast %cst_13 : f32 to vector<128x1xf32>
    %30 = arith.select %16, %28, %29 : vector<128x1xi1>, vector<128x1xf32>
    %31 = vector.shape_cast %30 : vector<128x1xf32> to vector<1x128x1xf32>
    %cst_14 = arith.constant dense<0.000000e+00> : vector<1xf32>
    %32 = vector.multi_reduction <add>, %31, %cst_14 [1, 2] : vector<1x128x1xf32> to vector<1xf32>
    %33 = vector.shape_cast %32 : vector<1xf32> to vector<1x1x1xf32>
    %34 = vector.extract %33[0, 0, 0] : f32 from vector<1x1x1xf32>
    %35 = vector.broadcast %34 : f32 to vector<1x1xf32>
    %36 = arith.extui %16 : vector<128x1xi1> to vector<128x1xi32>
    %37 = arith.sitofp %36 : vector<128x1xi32> to vector<128x1xf32>
    %38 = vector.shape_cast %37 : vector<128x1xf32> to vector<1x128x1xf32>
    %cst_15 = arith.constant dense<0.000000e+00> : vector<1xf32>
    %39 = vector.multi_reduction <add>, %38, %cst_15 [1, 2] : vector<1x128x1xf32> to vector<1xf32>
    %40 = vector.shape_cast %39 : vector<1xf32> to vector<1x1x1xf32>
    %41 = vector.extract %40[0, 0, 0] : f32 from vector<1x1x1xf32>
    %42 = vector.broadcast %41 : f32 to vector<1x1xf32>
    %43 = vector.shape_cast %35 : vector<1x1xf32> to vector<1x1xf32>
    %44 = vector.broadcast %43 : vector<1x1xf32> to vector<1x128xf32>
    %c0_16 = arith.constant 0 : index
    %c0_17 = arith.constant 0 : index
    %45 = vector.load %arg6[%c0_16, %c0_17] : memref<1x128xf32, #tpu.memory_space<vmem>>, vector<1x128xf32>
    tpu.vector_store %arg6[%c0_16, %c0_17], %44 {strides = array<i32>} : memref<1x128xf32, #tpu.memory_space<vmem>>, vector<1x128xf32>,
    %46 = vector.shape_cast %42 : vector<1x1xf32> to vector<1x1xf32>
    %47 = vector.broadcast %46 : vector<1x1xf32> to vector<1x128xf32>
    %c0_18 = arith.constant 0 : index
    %c0_19 = arith.constant 0 : index
    %48 = vector.load %arg7[%c0_18, %c0_19] : memref<1x128xf32, #tpu.memory_space<vmem>>, vector<1x128xf32>
    tpu.vector_store %arg7[%c0_18, %c0_19], %47 {strides = array<i32>} : memref<1x128xf32, #tpu.memory_space<vmem>>, vector<1x128xf32>,
    return
  }
  func.func @transform_0(%arg0: i32) -> (i32, i32) {
    %c0_i32 = arith.constant 0 : i32
    %c0_i32_0 = arith.constant 0 : i32
    return %arg0, %c0_i32 : i32, i32
  }
  func.func @transform_1(%arg0: i32) -> (i32, i32) {
    %c0_i32 = arith.constant 0 : i32
    %c0_i32_0 = arith.constant 0 : i32
    %c0_i32_1 = arith.constant 0 : i32
    return %c0_i32, %c0_i32_0 : i32, i32
  }
  func.func @transform_2(%arg0: i32) -> (i32, i32) {
    %c0_i32 = arith.constant 0 : i32
    %c0_i32_0 = arith.constant 0 : i32
    %c0_i32_1 = arith.constant 0 : i32
    return %c0_i32, %c0_i32_0 : i32, i32
  }
  func.func @transform_3(%arg0: i32) -> (i32, i32) {
    %c0_i32 = arith.constant 0 : i32
    %c0_i32_0 = arith.constant 0 : i32
    return %arg0, %c0_i32 : i32, i32
  }
  func.func @transform_4(%arg0: i32) -> (i32, i32) {
    %c0_i32 = arith.constant 0 : i32
    %c0_i32_0 = arith.constant 0 : i32
    return %arg0, %c0_i32 : i32, i32
  }
  func.func @transform_5(%arg0: i32) -> (i32, i32) {
    %c0_i32 = arith.constant 0 : i32
    %c0_i32_0 = arith.constant 0 : i32
    return %c0_i32, %arg0 : i32, i32
  }
  func.func @transform_6(%arg0: i32) -> (i32, i32) {
    %c0_i32 = arith.constant 0 : i32
    %c0_i32_0 = arith.constant 0 : i32
    return %c0_i32, %arg0 : i32, i32
  }
}

</mosaic_0001>

<bundles_post_ra>
// kernel: tpu_custom_call.1
= control target key start
LH: loop header
LB: loop body
LE: loop exit
PB: predicated region body
PF: predicated region fallthrough
CT: control target
= control target key end

     0   :  { %s1046_s0 = inlined_call_operand.vmem [shape: f32[16,32], index: 0, kind: input, shape index: {}]   ;;  %s1047_s1 = inlined_call_operand.vmem [shape: f32[32,1], index: 1, kind: input, shape index: {}]   ;;  %s1048_s2 = inlined_call_operand.<no memory space> [shape: f32[1,1], index: 2, kind: input, shape index: {}]   ;;  %s1049_s3 = inlined_call_operand.vmem [shape: f32[16,1], index: 3, kind: input, shape index: {}]   ;;  %s1050_s4 = inlined_call_operand.vmem [shape: f32[16,1], index: 4, kind: output, shape index: {0}]   ;;  %s1051_s5 = inlined_call_operand.hbm [shape: f32[1,128], index: 5, kind: output, shape index: {1}]   ;;  %s1052_s6 = inlined_call_operand.hbm [shape: f32[1,128], index: 6, kind: output, shape index: {2}]  }
   0x1   :  { %v12_v0 = vstv %s1048_s2 }
   0x2   :  { %13 = vst [vmem:[#allocation2] sm:$0x1] %v12_v0 }
   0x3   :  { %14 = vsyncpa [#allocation5], 0  ;;  %v40_v1 = vld [vmem:[%s1047_s1] sm:$0xff]  ;;  %v41_v2 = vld [vmem:[%s1047_s1 + $0x8] sm:$0xff]  ;;  %vm51_vm0 = vcmask 261120  }
   0x4   :  { %v42_v3 = vld [vmem:[%s1047_s1 + $0x10] sm:$0xff]  ;;  %v812_v4 = vpack.c.bf16 %v41_v2, %v40_v1  ;;  %v43_v5 = vld [vmem:[%s1047_s1 + $0x18] sm:$0xff]  ;;  %v24_v6 = vld [vmem:[%s1046_s0] sm:$0xff] }
   0x5   :  { %v816_v7 = vpack.c.bf16 %v43_v5, %v42_v3  ;;  %788 = vmatprep.mubr.msk.f32.mxu0 %vm51_vm0, %v24_v6 }
   0x6   :  { %15 = vsyncpa [#allocation7], 0  ;;  %813 = vmatprep.subr.bf16.mxu0 %v812_v4  ;;  %820 = vmatprep.subr.bf16.mxu1 %v812_v4  ;;  %v25_v8 = vld [vmem:[%s1046_s0 + $0x8] sm:$0xff]  ;;  %v32_v9 = vld [vmem:[%s1046_s0 + $0x40] sm:$0xff]  ;;  %vm245_vm1 = vcmask 7168   ;;  %v887_v54 = vmov 0.0  }
   0x7   :  { %815 = vmatpush3.bf16.msra.mxu0 %v812_v4  ;;  %822 = vmatpush3.bf16.msra.mxu1 %v812_v4  ;;  %v33_v10 = vld [vmem:[%s1046_s0 + $0x48] sm:$0xff]  ;;  %v26_v11 = vld [vmem:[%s1046_s0 + $0x10] sm:$0xff]  ;;  %v27_v13 = vld [vmem:[%s1046_s0 + $0x18] sm:$0xff]  ;;  %s889_s19 = smov [#allocation6]  }
   0x8   :  { %817 = vmatprep.subr.bf16.mxu0 %v816_v7  ;;  %821 = vmatprep.subr.bf16.mxu1 %v816_v7  ;;  %v34_v12 = vld [vmem:[%s1046_s0 + $0x50] sm:$0xff]  ;;  %v28_v14 = vld [vmem:[%s1046_s0 + $0x20] sm:$0xff]  ;;  %v35_v15 = vld [vmem:[%s1046_s0 + $0x58] sm:$0xff]  ;;  %s723_s20 = sshll.u32 %s889_s19, 4  ;;  %s724_s20 = int_to_ptr.vmem [resolvable:$true] %s723_s20 }
   0x9   :  { %800 = vmatprep.mubr.msk.f32.mxu1 %vm51_vm0, %v32_v9  ;;  %v29_v16 = vld [vmem:[%s1046_s0 + $0x28] sm:$0xff]  ;;  %v36_v17 = vld [vmem:[%s1046_s0 + $0x60] sm:$0xff]  ;;  %v30_v18 = vld [vmem:[%s1046_s0 + $0x30] sm:$0xff] }
   0xa   :  { %v37_v19 = vld [vmem:[%s1046_s0 + $0x68] sm:$0xff]  ;;  %v31_v20 = vld [vmem:[%s1046_s0 + $0x38] sm:$0xff]  ;;  %v38_v21 = vld [vmem:[%s1046_s0 + $0x70] sm:$0xff] }
   0xb   :  { %819 = vmatpush3.bf16.msra.mxu0 %v816_v7  ;;  %823 = vmatpush3.bf16.msra.mxu1 %v816_v7  ;;  %v39_v22 = vld [vmem:[%s1046_s0 + $0x78] sm:$0xff]  ;;  %v741_v23 = vld [vmem:[#allocation2] ss:$0 sm:$0xff]  ;;  %v263_v40 = vld [vmem:[%s1049_s3 + $0x8] sm:$0xff] }
   0xc   :  { %v262_v41 = vld [vmem:[%s1049_s3] sm:$0xff]  ;;  %vm330_vm2 = vcmp.ne.f32.partialorder %v263_v40, -1.0  ;;  %s888_s3 = smov [#allocation4]  }
   0xd   :  { %vm329_vm3 = vcmp.ne.f32.partialorder %v262_v41, -1.0  ;;  %v759_v56 = vsel %vm330_vm2, 1.0, %v887_v54 }
   0xe   :  { %789 = vmatmul.mubr.msk.f32.vlgmr.msra.gmra.mrb[0].mxu0 %vm51_vm0, %v25_v8  ;;  %801 = vmatmul.mubr.msk.f32.vlgmr.msra.gmra.mrb[0].mxu1 %vm51_vm0, %v33_v10  ;;  %v758_v55 = vsel %vm329_vm3, 1.0, %v887_v54  ;;  %v626_v62 = vsel %vm245_vm1, %v759_v56, 0.0 }
   0xf   :  { %791 = vmatprep.mubr.msk.f32.mxu0 %vm51_vm0, %v26_v11  ;;  %803 = vmatprep.mubr.msk.f32.mxu1 %vm51_vm0, %v34_v12  ;;  %v625_v61 = vsel %vm245_vm1, %v758_v55, 0.0 }
  0x10   :  { %v627_v0 = vadd.f32 %v626_v62, %v625_v61 }
  0x12   :  { %792 = vmatmul.mubr.msk.f32.gmra.mrb[2].mxu0 %vm51_vm0, %v27_v13  ;;  %804 = vmatmul.mubr.msk.f32.gmra.mrb[2].mxu1 %vm51_vm0, %v35_v15 }
  0x13   :  { %794 = vmatprep.mubr.msk.f32.mxu0 %vm51_vm0, %v28_v14  ;;  %806 = vmatprep.mubr.msk.f32.mxu1 %vm51_vm0, %v36_v17 }
  0x16   :  { %795 = vmatmul.mubr.msk.f32.gmra.mrb[4].mxu0 %vm51_vm0, %v29_v16  ;;  %807 = vmatmul.mubr.msk.f32.gmra.mrb[4].mxu1 %vm51_vm0, %v37_v19 }
  0x17   :  { %797 = vmatprep.mubr.msk.f32.mxu0 %vm51_vm0, %v30_v18  ;;  %809 = vmatprep.mubr.msk.f32.mxu1 %vm51_vm0, %v38_v21 }
  0x1a   :  { %798 = vmatmul.mubr.msk.f32.gmra.mrb[6].mxu0 %vm51_vm0, %v31_v20  ;;  %810 = vmatmul.mubr.msk.f32.gmra.mrb[6].mxu1 %vm51_vm0, %v39_v22 }
  0xe1   :  { %v790_v24 = vpop.f32.mrb[0].mxu0  ;;  %v802_v1 = vpop.f32.mrb[0].mxu1 }
  0xe2   :  { %v172_v25 = vadd.f32 %v790_v24, %v741_v23  ;;  %v166_v26 = vpop.f32.mrb[1].mxu0  ;;  %v206_v3 = vpop.f32.mrb[1].mxu1 }
  0xe3   :  { %v167_v27 = vadd.f32 %v741_v23, %v166_v26 }
  0xe4   :  { %247 = vst.msk [vmem:[#allocation3 + $0x8] sm:$0xff] %vm245_vm1, %v172_v25  ;;  %v410_v28 = vand.u32 2147483647, %v172_v25  ;;  %v362_v42 = vmax.f32 %v172_v25, 0.0  ;;  %v378_v43 = vmul.f32 %v263_v40, %v172_v25 }
  0xe5   :  { %246 = vst.msk [vmem:[#allocation3] sm:$0xff] %vm245_vm1, %v167_v27  ;;  %v409_v29 = vand.u32 2147483647, %v167_v27  ;;  %v361_v44 = vmax.f32 %v167_v27, 0.0  ;;  %v377_v45 = vmul.f32 %v262_v41, %v167_v27  ;;  %v793_v2 = vpop.f32.mrb[2].mxu0  ;;  %v805_v5 = vpop.f32.mrb[2].mxu1 }
  0xe6   :  { %v426_v30 = vsub.f32 0.0, %v410_v28  ;;  %v394_v48 = vsub.f32 %v362_v42, %v378_v43  ;;  %v176_v4 = vpop.f32.mrb[3].mxu0  ;;  %v216_v7 = vpop.f32.mrb[3].mxu1 }
  0xe7   :  { %v425_v31 = vsub.f32 0.0, %v409_v29  ;;  %v393_v50 = vsub.f32 %v361_v44, %v377_v45 }
  0xe8   :  { %v443_v32 = vmul.f32 1.442695, %v426_v30 }
  0xe9   :  { %v441_v33 = vmul.f32 1.442695, %v425_v31  ;;  %v796_v6 = vpop.f32.mrb[4].mxu0  ;;  %v808_v9 = vpop.f32.mrb[4].mxu1 }
  0xea   :  { %831 = vpow2.f32 %v443_v32  ;;  %v186_v8 = vpop.f32.mrb[5].mxu0  ;;  %v226_v10 = vpop.f32.mrb[5].mxu1 }
  0xeb   :  { %v702_v34 = vld [vmem:[#allocation3 + $0x8] sm:$0xff]  ;;  %833 = vpow2.f32 %v441_v33 }
  0xec   :  { %703 = vst [vmem:[%s1050_s4 + $0x8] sm:$0xff] %v702_v34  ;;  %v700_v35 = vld [vmem:[#allocation3] sm:$0xff] }
  0xed   :  { %701 = vst [vmem:[%s1050_s4] sm:$0xff] %v700_v35  ;;  %v799_v11 = vpop.f32.mrb[6].mxu0  ;;  %v811_v12 = vpop.f32.mrb[6].mxu1  ;;  %s713_s4 = sshll.u32 %s888_s3, 4  ;;  %s714_s4 = int_to_ptr.vmem [resolvable:$true] %s713_s4 }
  0xee   :  { %v196_v13 = vpop.f32.mrb[7].mxu0  ;;  %v236_v14 = vpop.f32.mrb[7].mxu1  ;;  %s839_s21 = scalar_lea.vmem %s714_s4, 16  ;;  %s843_s22 = scalar_lea.vmem %s714_s4, 32 }
  0xef   :  { %p840_p0 = scmp.ne.s32.totalorder %s714_s4, %s839_s21  ;;  %p844_p1 = scmp.lt.s32.totalorder %s714_s4, %s714_s4 }
  0xf0   :  { %p845_p2 = scmp.lt.s32.totalorder %s843_s22, %s839_s21 }
  0xf2   :  { %p846_p3 = por %p845_p2, %p844_p1 }
  0xf4   :  { %v832_v36 = vpop.eup %831  ;;  %p847_p4 = pnand %p846_p3, %p840_p0 }
  0xf5   :  { %v834_v37 = vpop.eup %833  ;;  %v474_v38 = vadd.f32 1.0, %v832_v36 }
  0xf6   :  { %v473_v39 = vadd.f32 1.0, %v834_v37 }
  0xf7   :  { %835 = vlog2.f32 %v474_v38 }
  0xf8   :  { %837 = vlog2.f32 %v473_v39 }
 0x101   :  { %v836_v46 = vpop.eup %835 }
 0x102   :  { %v838_v47 = vpop.eup %837  ;;  %v492_v49 = vmul.f32 0.6931472, %v836_v46 }
 0x103   :  { %v490_v51 = vmul.f32 0.6931472, %v838_v47 }
 0x104   :  { %v522_v52 = vadd.f32 %v492_v49, %v394_v48 }
 0x105   :  { %v521_v53 = vadd.f32 %v490_v51, %v393_v50 }
 0x106   :  { %v538_v57 = vsel %vm330_vm2, %v522_v52, 0.0 }
 0x107   :  { %v537_v58 = vsel %vm329_vm3, %v521_v53, 0.0  ;;  %v554_v59 = vsel %vm245_vm1, %v538_v57, 0.0 }
 0x108   :  { %v553_v60 = vsel %vm245_vm1, %v537_v58, 0.0 }
 0x109   :  { %v555_v63 = vadd.f32 %v554_v59, %v553_v60 }
 0x10b   :  { %584 = vadd.xlane.f32.xlu0 %v555_v63 }
 0x10f   :  { %656 = vadd.xlane.f32.xlu0 %v627_v0 }
 0x198   :  { %v585_v15 = vpop.xlane.xlu0 %584 }
 0x199   :  { %v586_v16 = vrot.slane %v585_v15, 4 }
 0x19b   :  { %v587_v17 = vadd.f32 %v586_v16, %v585_v15 }
 0x19c   :  { %v657_v18 = vpop.xlane.xlu0 %656 }
 0x19d   :  { %v588_v19 = vrot.slane %v587_v17, 2  ;;  %v658_v20 = vrot.slane %v657_v18, 4 }
 0x19f   :  { %v659_v21 = vadd.f32 %v658_v20, %v657_v18  ;;  %v589_v22 = vadd.f32 %v588_v19, %v587_v17 }
 0x1a1   :  { %v660_v23 = vrot.slane %v659_v21, 2  ;;  %v590_v24 = vrot.slane %v589_v22, 1 }
 0x1a3   :  { %v661_v25 = vadd.f32 %v660_v23, %v659_v21  ;;  %v591_v26 = vadd.f32 %v590_v24, %v589_v22 }
 0x1a5   :  { %824 = vpush %v591_v26  ;;  %v662_v27 = vrot.slane %v661_v25, 1 }
 0x1a7   :  { %v663_v28 = vadd.f32 %v662_v27, %v661_v25 }
 0x1a9   :  { %826 = vpush %v663_v28 }
 0x1d6   :  { %s825_s18 = spop %824 }
 0x1d7   :  { %v665_v29 = vstv %s825_s18 }
 0x1d8   :  { %666 = vst [vmem:[#allocation4] sm:$0x1] %v665_v29 }
 0x1d9   :  { %850 = shalt.err (!%p847_p4)
}
 0x1da   :  { %s851_s25 = scalar_lea.hbm %s1051_s5, 16 }
 0x1db   :  { %p852_p5 = scmp.ne.s32.totalorder %s1051_s5, %s851_s25  ;;  %p855_p6 = scmp.lt.u32.totalorder %s851_s25, %s1051_s5 }
 0x1dd   :  { %p857_p7 = pnand %p855_p6, %p852_p5 }
 0x1df   :  { %860 = shalt.err (!%p857_p7)
}
 0x1e0   :  { %716 = dma.vmem_to_hbm [thread:$0]  %s714_s4, 16, %s1051_s5, [#allocation5]  }
 0x1e1   :  { %s827_s7 = spop %826  ;;  %s861_s8 = scalar_lea.vmem %s724_s20, 16 }
 0x1e2   :  { %v667_v30 = vstv %s827_s7  ;;  %p862_p8 = scmp.ne.s32.totalorder %s724_s20, %s861_s8  ;;  %s865_s9 = scalar_lea.vmem %s724_s20, 32 }
 0x1e3   :  { %668 = vst [vmem:[#allocation6] sm:$0x1] %v667_v30  ;;  %p866_p9 = scmp.lt.s32.totalorder %s724_s20, %s724_s20  ;;  %p867_p10 = scmp.lt.s32.totalorder %s865_s9, %s861_s8 }
 0x1e5   :  { %p868_p11 = por %p867_p10, %p866_p9 }
 0x1e7   :  { %p869_p12 = pnand %p868_p11, %p862_p8 }
 0x1e9   :  { %872 = shalt.err (!%p869_p12)
}
 0x1ea   :  { %s873_s0 = scalar_lea.hbm %s1052_s6, 16 }
 0x1eb   :  { %p874_p13 = scmp.ne.s32.totalorder %s1052_s6, %s873_s0  ;;  %p877_p0 = scmp.lt.u32.totalorder %s873_s0, %s1052_s6 }
 0x1ed   :  { %p879_p1 = pnand %p877_p0, %p874_p13 }
 0x1ef   :  { %882 = shalt.err (!%p879_p1)
}
 0x1f0   :  { %726 = dma.vmem_to_hbm [thread:$0]  %s724_s20, 16, %s1052_s6, [#allocation7]  }
 0x1f1   :  { %883 = dma.done.wait [#allocation5], 16  }
 0x1f2   :  { %884 = vsyncadd [#allocation5], 4294967280 }
 0x1f3   :  { %885 = dma.done.wait [#allocation7], 16  }
 0x1f4   :  { %886 = vsyncadd [#allocation7], 4294967280 }
 0x1f5   :  { %735 = vsyncpa [#allocation5], 1 }
 0x1f6   :  { %736 = vsyncpa [#allocation7], 1 }

</bundles_post_ra>
